<compile_context>
chip_gen: v7x
topology: tpu7x:2x2x1
jax: 0.10.0
libtpu: 0.0.40
codegen_flags: <defaults>
</compile_context>

<pallas_src>
import jax
import jax.numpy as jnp
import numpy as np
from jax.experimental import pallas as pl
from jax.experimental.pallas import tpu as pltpu

# ---------------- hyper-parameters (mirror AudioNet.__init__) -----------------
TARGET_OUTPUT_SIZE = 32
SAMPLE_RATE = 1600            # small rate -> only 3 base conv layers
CONTEXT = 1
NUM_DEEP = 3                  # num_additional_convolutions
OUT_CH = 32                   # out_channels
KSIZE = 3                     # kernal_size
PAD = (KSIZE - 1) // 2        # = 1
EPS = 1e-5                    # nn.BatchNorm1d default eps
NEG = -1.0e30                 # finite stand-in for MaxPool1d's -inf padding

INPUT_SIZE = TARGET_OUTPUT_SIZE + 2 * CONTEXT * TARGET_OUTPUT_SIZE   # L = 96


def _base_conv_sizes(sample_rate):
    # mirrors the base-layer construction loop in AudioNet.__init__
    sr = sample_rate
    ks = [int(10 * sample_rate // sr) + 1]
    while sr > 400:
        sr = sr // 2
        ks.append(int(10 * sample_rate // sr) + 1)
    pads = [(k - 1) // 2 for k in ks]
    return ks, pads


BASE_KS, BASE_PADS = _base_conv_sizes(SAMPLE_RATE)    # [11, 21, 41], [5, 10, 20]
N_BASE = len(BASE_KS)                                 # 3 (== pool1 stride)
PMAX = max(BASE_PADS)                                 # 20

L = INPUT_SIZE                                        # 96 valid time steps
LP = 128                                              # lane-padded time axis
C_CAT = N_BASE * OUT_CH                               # 96 concatenated channels
C1 = (C_CAT + 2 * PAD - KSIZE) // N_BASE + 1          # pool1 output = 32
L2 = (L + 2 * PAD - KSIZE) // NUM_DEEP + 1            # pool2 output = 32
assert C1 == OUT_CH and N_BASE == 3 and NUM_DEEP == 3

K_TOTAL = sum(BASE_KS)                                # 73 base conv taps total
BIAS_ROW = K_TOTAL                                    # ones-row index in im2col slab
KP = C_CAT                                            # padded contraction dim (96)

# Offsets inside the packed small-vector slab (all multiples of 32 -> aligned
# sublane slices inside the kernel).
G_OFF = NUM_DEEP * OUT_CH      # 96   gamma
B_OFF = G_OFF + OUT_CH         # 128  beta
W_OFF = B_OFF + OUT_CH         # 160  fc1 weight
FCB_OFF = W_OFF + OUT_CH       # 192  fc1 bias
VEC_LEN = FCB_OFF + OUT_CH     # 224


# ------------------------------- Pallas kernel --------------------------------
def audionet_kernel(xcol_ref, w_ref, vec_ref, out_ref):
    f32 = jnp.float32
    lane = jax.lax.broadcasted_iota(jnp.int32, (OUT_CH, LP), 1)
    valid = lane < L                                   # (32,128) time-validity mask

    # ---- base Conv1d(1->32) bank + pool1, folded into ONE MXU matmul ----------
    # w_ref[:96] is the row-permuted block-diagonal base weight matrix; its three
    # 32-row blocks are exactly pool1's three window views over the concatenated
    # channels.  Bias is folded into column BIAS_ROW (pairs with the all-ones
    # row of the im2col slab).
    mm = jnp.dot(w_ref[0:C_CAT, :], xcol_ref[...],
                 preferred_element_type=f32)           # (96, 128)
    y = jnp.maximum(jnp.maximum(mm[0:OUT_CH], mm[OUT_CH:2 * OUT_CH]),
                    mm[2 * OUT_CH:3 * OUT_CH])         # pool1 -> (32, 128)
    y = jnp.where(valid, y, 0.0)                       # zero tail lanes (conv halo)

    # ---- deeper Conv1d(32->32, k=3, p=1) + ReLU, 3 taps fused per matmul ------
    for l in range(NUM_DEEP):
        slab = jnp.concatenate(
            [pltpu.roll(y, shift=1, axis=1),           # y[:, t-1]  (lane 0 <- 0)
             y,                                        # y[:, t]
             pltpu.roll(y, shift=LP - 1, axis=1)],     # y[:, t+1]  (lane 95 <- 0)
            axis=0)                                    # (96, 128)
        wd = w_ref[C_CAT + OUT_CH * l:C_CAT + OUT_CH * (l + 1), :]   # (32, 96)
        bd = vec_ref[OUT_CH * l:OUT_CH * (l + 1), :]                 # (32, 1)
        acc = jnp.dot(wd, slab, preferred_element_type=f32) + bd     # (32, 128)
        y = jnp.where(valid, jnp.maximum(acc, 0.0), 0.0)             # ReLU + mask

    # ---- BatchNorm1d(32): training-mode batch stats over the 96 valid steps ---
    # One-pass sums (tail lanes of y are zero, so full-lane sums == valid sums).
    inv_n = 1.0 / float(L)
    mean = jnp.sum(y, axis=1, keepdims=True) * inv_n              # (32, 1)
    ex2 = jnp.sum(y * y, axis=1, keepdims=True) * inv_n           # (32, 1)
    var = jnp.maximum(ex2 - mean * mean, 0.0)                     # biased variance
    gamma = vec_ref[G_OFF:G_OFF + OUT_CH, :]                      # (32, 1)
    beta = vec_ref[B_OFF:B_OFF + OUT_CH, :]                       # (32, 1)
    scale = jax.lax.rsqrt(var + EPS) * gamma
    ybn = (y - mean) * scale + beta
    # TODO(synk): BatchNorm running_mean/running_var buffer updates (a training
    # side effect) are not materialized; only the forward output is produced.

    # ---- pool2: MaxPool1d(k=3, stride=3, pad=1) over time ---------------------
    # Window-max at every time step via two cheap XLU rolls on a tail-masked
    # slab (the NEG tail lane rolled into lane 0 plays MaxPool1d's -inf pad),
    # then a single one-hot stride-3 decimation matmul keeps it lane-dense.
    ybn_m = jnp.where(valid, ybn, NEG)
    wmax = jnp.maximum(
        jnp.maximum(pltpu.roll(ybn_m, shift=1, axis=1), ybn_m),   # t-1, t
        pltpu.roll(ybn_m, shift=LP - 1, axis=1))                  # t+1
    tt = jax.lax.broadcasted_iota(jnp.int32, (LP, LP), 0)         # time index
    jj = jax.lax.broadcasted_iota(jnp.int32, (LP, LP), 1)         # output index
    sel = jnp.where(tt == 3 * jj, 1.0, 0.0)                       # one-hot decimator
    z = jnp.dot(wmax, sel, preferred_element_type=f32)            # (32, 128)

    # ---- fc1: Linear(32 -> 1) as VPU multiply + sublane reduction -------------
    fcw = vec_ref[W_OFF:W_OFF + OUT_CH, :]                        # (32, 1)
    fcb = vec_ref[FCB_OFF:FCB_OFF + 1, :]                         # (1, 1)
    out = jnp.sum(z * fcw, axis=0, keepdims=True) + fcb           # (1, 128)
    out_ref[...] = jnp.broadcast_to(out, (8, LP))                 # dense store


# ------------------------- parameter / input packing ---------------------------
_offs = []
for _k, _p in zip(BASE_KS, BASE_PADS):
    _o0 = PMAX - _p
    _offs.extend(range(_o0, _o0 + _k))
_IM2COL_IDX = (np.asarray(_offs, np.int32)[:, None]
               + np.arange(LP, dtype=np.int32)[None, :])          # (73, 128)
_XPAD_LEN = PMAX + L + PMAX + (LP - L)                            # 168


def pack_params(params):
    """One-time packing of PyTorch-shaped params into the kernel's two slabs."""
    bw, bb, dw, db, gamma, beta, fcw, fcb = params
    f32 = np.float32
    col_start = np.concatenate([[0], np.cumsum(BASE_KS)])[:-1]    # [0, 11, 32]

    # block-"diagonal" base weights (PyTorch cat order) + biases
    wbig = np.zeros((C_CAT, KP), f32)
    bcat = np.zeros((C_CAT,), f32)
    for c in range(N_BASE):
        w = np.asarray(bw[c], f32)[:, 0, :]                       # (32, K_c)
        wbig[c * OUT_CH:(c + 1) * OUT_CH,
             col_start[c]:col_start[c] + BASE_KS[c]] = w
        bcat[c * OUT_CH:(c + 1) * OUT_CH] = np.asarray(bb[c], f32)

    # Fold pool1 (channel max-pool, k=3, stride=3, pad=1) into a row permutation:
    # output row 32*si + j selects cat-channel 3j + si - 1; the (j=0, si=0) row
    # (which would be the -inf pad row) duplicates cat-channel 0 so the max is
    # unchanged.
    si = np.repeat(np.arange(N_BASE), OUT_CH)
    jv = np.tile(np.arange(OUT_CH), N_BASE)
    src = np.maximum(N_BASE * jv + si - 1, 0)
    wmm = wbig[src].copy()                                        # (96, 96)
    wmm[:, BIAS_ROW] = bcat[src]                                  # bias column

    # deeper conv weights: per layer (32, 96) = [W[:,:,0] | W[:,:,1] | W[:,:,2]]
    wdeep = np.concatenate(
        [np.concatenate([np.asarray(w, f32)[:, :, k] for k in range(KSIZE)],
                        axis=1) for w in dw], axis=0)             # (96, 96)
    wpack = np.concatenate([wmm, wdeep], axis=0)                  # (192, 96)

    vec = np.zeros((VEC_LEN, 1), f32)
    vec[0:NUM_DEEP * OUT_CH, 0] = np.concatenate([np.asarray(b, f32) for b in db])
    vec[G_OFF:G_OFF + OUT_CH, 0] = np.asarray(gamma, f32)
    vec[B_OFF:B_OFF + OUT_CH, 0] = np.asarray(beta, f32)
    vec[W_OFF:W_OFF + OUT_CH, 0] = np.asarray(fcw, f32)[0]
    vec[FCB_OFF, 0] = np.asarray(fcb, f32)[0]
    return jnp.asarray(wpack), jnp.asarray(vec)


def _build_xcol(x):
    """im2col slab (96, 128): 73 shifted input rows, an all-ones bias row, zeros."""
    if x.ndim == 3:                                   # mirrors `x = x.squeeze(0)`
        x = jnp.squeeze(x, axis=0)                    # (1, L)
    xr = x[0].astype(jnp.float32)                     # (L,)
    xpad = jnp.zeros((_XPAD_LEN,), jnp.float32).at[PMAX:PMAX + L].set(xr)
    xcol = xpad[_IM2COL_IDX]                          # (73, 128) gather
    return jnp.concatenate(
        [xcol,
         jnp.ones((1, LP), jnp.float32),              # bias row (index 73)
         jnp.zeros((KP - K_TOTAL - 1, LP), jnp.float32)],
        axis=0)                                       # (96, 128)


@jax.jit
def audionet_forward(x, wpack, vec):
    """x: (1, 1, L) or (1, L) float32.  Returns (1, L2) float32."""
    xcol = _build_xcol(x)
    vmem = pl.BlockSpec(memory_space=pltpu.MemorySpace.VMEM)
    out = pl.pallas_call(
        audionet_kernel,
        out_shape=jax.ShapeDtypeStruct((8, LP), jnp.float32),
        in_specs=[vmem, vmem, vmem],
        out_specs=vmem,
    )(xcol, wpack, vec)
    return out[0:1, 0:L2]


# --------------------------- numpy float64 reference ---------------------------
def _np_conv1d(x, w, b, pad):
    cout, _, k = w.shape
    length = x.shape[1]
    xp = np.pad(x, ((0, 0), (pad, pad)))
    out = np.empty((cout, length), np.float64)
    for t in range(length):
        out[:, t] = np.tensordot(w, xp[:, t:t + k], axes=([1, 2], [0, 1])) + b
    return out


def _np_maxpool1d(x, kernel, stride, pad):
    c, length = x.shape
    lout = (length + 2 * pad - kernel) // stride + 1
    xp = np.pad(x, ((0, 0), (pad, pad)), constant_values=-np.inf)
    out = np.empty((c, lout), np.float64)
    for j in range(lout):
        out[:, j] = xp[:, j * stride:j * stride + kernel].max(axis=1)
    return out


def reference_forward(x, params):
    bw, bb, dw, db, gamma, beta, fcw, fcb = params
    f64 = lambda a: np.asarray(a, np.float64)
    x = f64(x)
    if x.ndim == 3:
        x = x[0]                                                     # (1, L)
    outs = [_np_conv1d(x, f64(w), f64(b), p)
            for w, b, p in zip(bw, bb, BASE_PADS)]
    xcat = np.concatenate(outs, axis=0)                              # (C_CAT, L)
    x = _np_maxpool1d(xcat.T, KSIZE, N_BASE, PAD).T                  # (OUT_CH, L)
    for w, b in zip(dw, db):
        x = np.maximum(_np_conv1d(x, f64(w), f64(b), PAD), 0.0)
    xt = x.T                                                         # (L, OUT_CH)
    mean, var = xt.mean(axis=0), xt.var(axis=0)                      # biased (training BN)
    xt = (xt - mean) / np.sqrt(var + EPS) * f64(gamma) + f64(beta)
    x = _np_maxpool1d(xt.T, KSIZE, NUM_DEEP, PAD)                    # (OUT_CH, L2)
    out = x.T @ f64(fcw).T + f64(fcb)                                # (L2, 1)
    return out.T                                                     # (1, L2)


# ------------------------------------ main --------------------------------------
if __name__ == "__main__":
    key = jax.random.PRNGKey(0)
    keys = jax.random.split(key, 17)

    # deterministic parameter init in PyTorch shapes (synthetic; no checkpoint)
    bw = [0.1 * jax.random.normal(keys[i], (OUT_CH, 1, K), jnp.float32)
          for i, K in enumerate(BASE_KS)]
    bb = [0.1 * jax.random.normal(keys[3 + i], (OUT_CH,), jnp.float32)
          for i in range(N_BASE)]
    dw = [0.1 * jax.random.normal(keys[6 + l], (OUT_CH, OUT_CH, KSIZE), jnp.float32)
          for l in range(NUM_DEEP)]
    db = [0.1 * jax.random.normal(keys[9 + l], (OUT_CH,), jnp.float32)
          for l in range(NUM_DEEP)]
    gamma = 1.0 + 0.1 * jax.random.normal(keys[12], (OUT_CH,), jnp.float32)
    beta = 0.1 * jax.random.normal(keys[13], (OUT_CH,), jnp.float32)
    fcw = 0.1 * jax.random.normal(keys[14], (1, OUT_CH), jnp.float32)
    fcb = 0.1 * jax.random.normal(keys[15], (1,), jnp.float32)
    params = (bw, bb, dw, db, gamma, beta, fcw, fcb)

    x = jax.random.normal(keys[16], (1, 1, INPUT_SIZE), jnp.float32)

    wpack, vec = pack_params(params)                 # one-time packing (2 slabs)
    out = audionet_forward(x, wpack, vec)
    out = jax.block_until_ready(out)
    assert out.shape == (1, L2), out.shape

    ref = reference_forward(x, params)
    np.testing.assert_allclose(np.asarray(out, np.float64), ref, rtol=2e-2, atol=2e-2)

    print("KERNEL_OK")
</pallas_src>

<mosaic_0001>
module attributes {stable_mosaic.version = 11 : i64} {
  func.func @audionet_kernel(%arg0: memref<96x128xf32, #tpu.memory_space<vmem>>, %arg1: memref<192x96xf32, #tpu.memory_space<vmem>>, %arg2: memref<224x1xf32, #tpu.memory_space<vmem>>, %arg3: memref<8x128xf32, #tpu.memory_space<vmem>>) attributes {dimension_semantics = [], scalar_prefetch = 0 : i64, scratch_operands = 0 : i64, tpu.core_type = #tpu.core_type<tc>} {
    %0 = tpu.iota {dimensions = array<i32: 1>} : vector<32x128xi32>
    %c96_i32 = arith.constant 96 : i32
    %1 = vector.broadcast %c96_i32 : i32 to vector<32x128xi32>
    %2 = arith.cmpi slt, %0, %1 : vector<32x128xi32>
    %c0 = arith.constant 0 : index
    %c0_0 = arith.constant 0 : index
    %3 = vector.load %arg1[%c0, %c0_0] : memref<192x96xf32, #tpu.memory_space<vmem>>, vector<96x96xf32>
    %c0_1 = arith.constant 0 : index
    %c0_2 = arith.constant 0 : index
    %4 = vector.load %arg0[%c0_1, %c0_2] : memref<96x128xf32, #tpu.memory_space<vmem>>, vector<96x128xf32>
    %cst = arith.constant dense<0.000000e+00> : vector<96x128xf32>
    %5 = tpu.matmul %3, %4, %cst {dimension_numbers = #tpu.dot_dimension_numbers<[1], [0], [0], [1], [0, 0, 1, 1], [], []>} : vector<96x96xf32>, vector<96x128xf32>, vector<96x128xf32> -> vector<96x128xf32>
    %6 = vector.extract_strided_slice %5 {offsets = [0, 0], sizes = [32, 128], strides = [1, 1]} : vector<96x128xf32> to vector<32x128xf32>
    %7 = vector.extract_strided_slice %5 {offsets = [32, 0], sizes = [32, 128], strides = [1, 1]} : vector<96x128xf32> to vector<32x128xf32>
    %8 = arith.maximumf %6, %7 : vector<32x128xf32>
    %9 = vector.extract_strided_slice %5 {offsets = [64, 0], sizes = [32, 128], strides = [1, 1]} : vector<96x128xf32> to vector<32x128xf32>
    %10 = arith.maximumf %8, %9 : vector<32x128xf32>
    %cst_3 = arith.constant 0.000000e+00 : f32
    %11 = vector.broadcast %cst_3 : f32 to vector<32x128xf32>
    %12 = arith.select %2, %10, %11 : vector<32x128xi1>, vector<32x128xf32>
    %c1_i32 = arith.constant 1 : i32
    %13 = tpu.dynamic_rotate %12 by %c1_i32 dim 1 : vector<32x128xf32>, i32 -> vector<32x128xf32>
    %c127_i32 = arith.constant 127 : i32
    %14 = tpu.dynamic_rotate %12 by %c127_i32 dim 1 : vector<32x128xf32>, i32 -> vector<32x128xf32>
    %15 = tpu.concatenate %13, %12, %14 in 0 : vector<32x128xf32>, vector<32x128xf32>, vector<32x128xf32> -> vector<96x128xf32>
    %c96 = arith.constant 96 : index
    %c0_4 = arith.constant 0 : index
    %16 = vector.load %arg1[%c96, %c0_4] : memref<192x96xf32, #tpu.memory_space<vmem>>, vector<32x96xf32>
    %c0_5 = arith.constant 0 : index
    %c0_6 = arith.constant 0 : index
    %17 = vector.load %arg2[%c0_5, %c0_6] : memref<224x1xf32, #tpu.memory_space<vmem>>, vector<32x1xf32>
    %cst_7 = arith.constant dense<0.000000e+00> : vector<32x128xf32>
    %18 = tpu.matmul %16, %15, %cst_7 {dimension_numbers = #tpu.dot_dimension_numbers<[1], [0], [0], [1], [0, 0, 1, 1], [], []>} : vector<32x96xf32>, vector<96x128xf32>, vector<32x128xf32> -> vector<32x128xf32>
    %19 = vector.broadcast %17 : vector<32x1xf32> to vector<32x128xf32>
    %20 = arith.addf %18, %19 : vector<32x128xf32>
    %cst_8 = arith.constant 0.000000e+00 : f32
    %21 = vector.broadcast %cst_8 : f32 to vector<32x128xf32>
    %22 = arith.maximumf %20, %21 : vector<32x128xf32>
    %cst_9 = arith.constant 0.000000e+00 : f32
    %23 = vector.broadcast %cst_9 : f32 to vector<32x128xf32>
    %24 = arith.select %2, %22, %23 : vector<32x128xi1>, vector<32x128xf32>
    %c1_i32_10 = arith.constant 1 : i32
    %25 = tpu.dynamic_rotate %24 by %c1_i32_10 dim 1 : vector<32x128xf32>, i32 -> vector<32x128xf32>
    %c127_i32_11 = arith.constant 127 : i32
    %26 = tpu.dynamic_rotate %24 by %c127_i32_11 dim 1 : vector<32x128xf32>, i32 -> vector<32x128xf32>
    %27 = tpu.concatenate %25, %24, %26 in 0 : vector<32x128xf32>, vector<32x128xf32>, vector<32x128xf32> -> vector<96x128xf32>
    %c128 = arith.constant 128 : index
    %c0_12 = arith.constant 0 : index
    %28 = vector.load %arg1[%c128, %c0_12] : memref<192x96xf32, #tpu.memory_space<vmem>>, vector<32x96xf32>
    %c32 = arith.constant 32 : index
    %c0_13 = arith.constant 0 : index
    %29 = vector.load %arg2[%c32, %c0_13] : memref<224x1xf32, #tpu.memory_space<vmem>>, vector<32x1xf32>
    %cst_14 = arith.constant dense<0.000000e+00> : vector<32x128xf32>
    %30 = tpu.matmul %28, %27, %cst_14 {dimension_numbers = #tpu.dot_dimension_numbers<[1], [0], [0], [1], [0, 0, 1, 1], [], []>} : vector<32x96xf32>, vector<96x128xf32>, vector<32x128xf32> -> vector<32x128xf32>
    %31 = vector.broadcast %29 : vector<32x1xf32> to vector<32x128xf32>
    %32 = arith.addf %30, %31 : vector<32x128xf32>
    %cst_15 = arith.constant 0.000000e+00 : f32
    %33 = vector.broadcast %cst_15 : f32 to vector<32x128xf32>
    %34 = arith.maximumf %32, %33 : vector<32x128xf32>
    %cst_16 = arith.constant 0.000000e+00 : f32
    %35 = vector.broadcast %cst_16 : f32 to vector<32x128xf32>
    %36 = arith.select %2, %34, %35 : vector<32x128xi1>, vector<32x128xf32>
    %c1_i32_17 = arith.constant 1 : i32
    %37 = tpu.dynamic_rotate %36 by %c1_i32_17 dim 1 : vector<32x128xf32>, i32 -> vector<32x128xf32>
    %c127_i32_18 = arith.constant 127 : i32
    %38 = tpu.dynamic_rotate %36 by %c127_i32_18 dim 1 : vector<32x128xf32>, i32 -> vector<32x128xf32>
    %39 = tpu.concatenate %37, %36, %38 in 0 : vector<32x128xf32>, vector<32x128xf32>, vector<32x128xf32> -> vector<96x128xf32>
    %c160 = arith.constant 160 : index
    %c0_19 = arith.constant 0 : index
    %40 = vector.load %arg1[%c160, %c0_19] : memref<192x96xf32, #tpu.memory_space<vmem>>, vector<32x96xf32>
    %c64 = arith.constant 64 : index
    %c0_20 = arith.constant 0 : index
    %41 = vector.load %arg2[%c64, %c0_20] : memref<224x1xf32, #tpu.memory_space<vmem>>, vector<32x1xf32>
    %cst_21 = arith.constant dense<0.000000e+00> : vector<32x128xf32>
    %42 = tpu.matmul %40, %39, %cst_21 {dimension_numbers = #tpu.dot_dimension_numbers<[1], [0], [0], [1], [0, 0, 1, 1], [], []>} : vector<32x96xf32>, vector<96x128xf32>, vector<32x128xf32> -> vector<32x128xf32>
    %43 = vector.broadcast %41 : vector<32x1xf32> to vector<32x128xf32>
    %44 = arith.addf %42, %43 : vector<32x128xf32>
    %cst_22 = arith.constant 0.000000e+00 : f32
    %45 = vector.broadcast %cst_22 : f32 to vector<32x128xf32>
    %46 = arith.maximumf %44, %45 : vector<32x128xf32>
    %cst_23 = arith.constant 0.000000e+00 : f32
    %47 = vector.broadcast %cst_23 : f32 to vector<32x128xf32>
    %48 = arith.select %2, %46, %47 : vector<32x128xi1>, vector<32x128xf32>
    %cst_24 = arith.constant dense<0.000000e+00> : vector<32xf32>
    %49 = vector.multi_reduction <add>, %48, %cst_24 [1] : vector<32x128xf32> to vector<32xf32>
    %50 = vector.shape_cast %49 : vector<32xf32> to vector<32x1xf32>
    %cst_25 = arith.constant 0.010416667 : f32
    %51 = vector.broadcast %cst_25 : f32 to vector<32x1xf32>
    %52 = arith.mulf %50, %51 : vector<32x1xf32>
    %53 = arith.mulf %48, %48 : vector<32x128xf32>
    %cst_26 = arith.constant dense<0.000000e+00> : vector<32xf32>
    %54 = vector.multi_reduction <add>, %53, %cst_26 [1] : vector<32x128xf32> to vector<32xf32>
    %55 = vector.shape_cast %54 : vector<32xf32> to vector<32x1xf32>
    %cst_27 = arith.constant 0.010416667 : f32
    %56 = vector.broadcast %cst_27 : f32 to vector<32x1xf32>
    %57 = arith.mulf %55, %56 : vector<32x1xf32>
    %58 = arith.mulf %52, %52 : vector<32x1xf32>
    %59 = arith.subf %57, %58 : vector<32x1xf32>
    %cst_28 = arith.constant 0.000000e+00 : f32
    %60 = vector.broadcast %cst_28 : f32 to vector<32x1xf32>
    %61 = arith.maximumf %59, %60 : vector<32x1xf32>
    %c96_29 = arith.constant 96 : index
    %c0_30 = arith.constant 0 : index
    %62 = vector.load %arg2[%c96_29, %c0_30] : memref<224x1xf32, #tpu.memory_space<vmem>>, vector<32x1xf32>
    %c128_31 = arith.constant 128 : index
    %c0_32 = arith.constant 0 : index
    %63 = vector.load %arg2[%c128_31, %c0_32] : memref<224x1xf32, #tpu.memory_space<vmem>>, vector<32x1xf32>
    %cst_33 = arith.constant 9.99999974E-6 : f32
    %64 = vector.broadcast %cst_33 : f32 to vector<32x1xf32>
    %65 = arith.addf %61, %64 : vector<32x1xf32>
    %66 = math.rsqrt %65 : vector<32x1xf32>
    %67 = arith.mulf %66, %62 : vector<32x1xf32>
    %68 = vector.broadcast %52 : vector<32x1xf32> to vector<32x128xf32>
    %69 = arith.subf %48, %68 : vector<32x128xf32>
    %70 = vector.broadcast %67 : vector<32x1xf32> to vector<32x128xf32>
    %71 = arith.mulf %69, %70 : vector<32x128xf32>
    %72 = vector.broadcast %63 : vector<32x1xf32> to vector<32x128xf32>
    %73 = arith.addf %71, %72 : vector<32x128xf32>
    %cst_34 = arith.constant -1.000000e+30 : f32
    %74 = vector.broadcast %cst_34 : f32 to vector<32x128xf32>
    %75 = arith.select %2, %73, %74 : vector<32x128xi1>, vector<32x128xf32>
    %c1_i32_35 = arith.constant 1 : i32
    %76 = tpu.dynamic_rotate %75 by %c1_i32_35 dim 1 : vector<32x128xf32>, i32 -> vector<32x128xf32>
    %77 = arith.maximumf %76, %75 : vector<32x128xf32>
    %c127_i32_36 = arith.constant 127 : i32
    %78 = tpu.dynamic_rotate %75 by %c127_i32_36 dim 1 : vector<32x128xf32>, i32 -> vector<32x128xf32>
    %79 = arith.maximumf %77, %78 : vector<32x128xf32>
    %80 = tpu.iota {dimensions = array<i32: 0>} : vector<128x128xi32>
    %81 = tpu.iota {dimensions = array<i32: 1>} : vector<128x128xi32>
    %c3_i32 = arith.constant 3 : i32
    %82 = vector.broadcast %c3_i32 : i32 to vector<128x128xi32>
    %83 = arith.muli %82, %81 : vector<128x128xi32>
    %84 = arith.cmpi eq, %80, %83 : vector<128x128xi32>
    %cst_37 = arith.constant 1.000000e+00 : f32
    %cst_38 = arith.constant 0.000000e+00 : f32
    %85 = vector.broadcast %cst_37 : f32 to vector<128x128xf32>
    %86 = vector.broadcast %cst_38 : f32 to vector<128x128xf32>
    %87 = arith.select %84, %85, %86 : vector<128x128xi1>, vector<128x128xf32>
    %cst_39 = arith.constant dense<0.000000e+00> : vector<32x128xf32>
    %88 = tpu.matmul %79, %87, %cst_39 {dimension_numbers = #tpu.dot_dimension_numbers<[1], [0], [0], [1], [0, 0, 1, 1], [], []>} : vector<32x128xf32>, vector<128x128xf32>, vector<32x128xf32> -> vector<32x128xf32>
    %c160_40 = arith.constant 160 : index
    %c0_41 = arith.constant 0 : index
    %89 = vector.load %arg2[%c160_40, %c0_41] : memref<224x1xf32, #tpu.memory_space<vmem>>, vector<32x1xf32>
    %c192 = arith.constant 192 : index
    %c0_42 = arith.constant 0 : index
    %90 = vector.load %arg2[%c192, %c0_42] : memref<224x1xf32, #tpu.memory_space<vmem>>, vector<1x1xf32>
    %91 = vector.broadcast %89 : vector<32x1xf32> to vector<32x128xf32>
    %92 = arith.mulf %88, %91 : vector<32x128xf32>
    %cst_43 = arith.constant dense<0.000000e+00> : vector<128xf32>
    %93 = vector.multi_reduction <add>, %92, %cst_43 [0] : vector<32x128xf32> to vector<128xf32>
    %94 = vector.shape_cast %93 : vector<128xf32> to vector<1x128xf32>
    %95 = vector.broadcast %90 : vector<1x1xf32> to vector<1x128xf32>
    %96 = arith.addf %94, %95 : vector<1x128xf32>
    %97 = vector.shape_cast %96 : vector<1x128xf32> to vector<1x128xf32>
    %98 = vector.broadcast %97 : vector<1x128xf32> to vector<8x128xf32>
    %c0_44 = arith.constant 0 : index
    %c0_45 = arith.constant 0 : index
    %99 = vector.load %arg3[%c0_44, %c0_45] : memref<8x128xf32, #tpu.memory_space<vmem>>, vector<8x128xf32>
    tpu.vector_store %arg3[%c0_44, %c0_45], %98 {strides = array<i32>} : memref<8x128xf32, #tpu.memory_space<vmem>>, vector<8x128xf32>,
    return
  }
}

</mosaic_0001>

<bundles_post_ra>
// kernel: audionet_forward.1
= control target key start
LH: loop header
LB: loop body
LE: loop exit
PB: predicated region body
PF: predicated region fallthrough
CT: control target
= control target key end

     0   :  { %vm41_vm0 = vcmask 785408   ;;  %v14_v35 = vlaneseq  ;;  %s1538_s5 = smov 127   ;;  %s1539_s6 = smov 1   ;;  %v1540_v61 = vmov 0   ;;  %s1928_s0 = inlined_call_operand.vmem [shape: f32[96,128], index: 0, kind: input, shape index: {}]   ;;  %s1929_s1 = inlined_call_operand.vmem [shape: f32[192,96], index: 1, kind: input, shape index: {}]   ;;  %s1930_s2 = inlined_call_operand.vmem [shape: f32[224,1], index: 2, kind: input, shape index: {}]   ;;  %s1931_s3 = inlined_call_operand.vmem [shape: f32[8,128], index: 3, kind: output, shape index: {}]  }
   0x1   :  { %v29_v0 = vld [vmem:[%s1928_s0] sm:$0xff]  ;;  %v30_v1 = vld [vmem:[%s1928_s0 + $0x8] sm:$0xff]  ;;  %v31_v2 = vld [vmem:[%s1928_s0 + $0x10] sm:$0xff]  ;;  %1469 = vset.pattern.permute.xlu1 %v1540_v61  ;;  %1468 = vset.pattern.permute.xlu0 %v1540_v61 }
   0x2   :  { %v1304_v3 = vpack.c.bf16 %v30_v1, %v29_v0  ;;  %v32_v4 = vld [vmem:[%s1928_s0 + $0x18] sm:$0xff]  ;;  %v33_v6 = vld [vmem:[%s1928_s0 + $0x20] sm:$0xff]  ;;  %v34_v7 = vld [vmem:[%s1928_s0 + $0x28] sm:$0xff]  ;;  %v1647_v40 = vand.u32 127, %v14_v35 }
   0x3   :  { %v1308_v5 = vpack.c.bf16 %v32_v4, %v31_v2  ;;  %v17_v8 = vld [vmem:[%s1929_s1] sm:$0xff]  ;;  %v1312_v9 = vpack.c.bf16 %v34_v7, %v33_v6  ;;  %v35_v10 = vld [vmem:[%s1928_s0 + $0x30] sm:$0xff]  ;;  %v36_v11 = vld [vmem:[%s1928_s0 + $0x38] sm:$0xff] }
   0x4   :  { %1305 = vmatprep.subr.bf16.mxu1 %v1304_v3  ;;  %1158 = vmatprep.mubr.msk.f32.mxu1 %vm41_vm0, %v17_v8  ;;  %v1316_v12 = vpack.c.bf16 %v36_v11, %v35_v10  ;;  %v37_v13 = vld [vmem:[%s1928_s0 + $0x40] sm:$0xff]  ;;  %v38_v14 = vld [vmem:[%s1928_s0 + $0x48] sm:$0xff]  ;;  %v39_v16 = vld [vmem:[%s1928_s0 + $0x50] sm:$0xff]  ;;  %vm16_vm1 = vcmp.lt.s32.totalorder %v1647_v40, 96 }
   0x5   :  { %1307 = vmatpush3.bf16.msra.mxu1 %v1304_v3  ;;  %v1320_v15 = vpack.c.bf16 %v38_v14, %v37_v13  ;;  %v40_v17 = vld [vmem:[%s1928_s0 + $0x58] sm:$0xff]  ;;  %v18_v19 = vld [vmem:[%s1929_s1 + $0x8] sm:$0xff]  ;;  %v19_v20 = vld [vmem:[%s1929_s1 + $0x10] sm:$0xff] }
   0x6   :  { %1309 = vmatprep.subr.bf16.mxu1 %v1308_v5  ;;  %v1324_v18 = vpack.c.bf16 %v40_v17, %v39_v16  ;;  %v20_v21 = vld [vmem:[%s1929_s1 + $0x18] sm:$0xff]  ;;  %v21_v22 = vld [vmem:[%s1929_s1 + $0x20] sm:$0xff]  ;;  %v22_v23 = vld [vmem:[%s1929_s1 + $0x28] sm:$0xff] }
   0x7   :  { %v23_v24 = vld [vmem:[%s1929_s1 + $0x30] sm:$0xff]  ;;  %v24_v25 = vld [vmem:[%s1929_s1 + $0x38] sm:$0xff]  ;;  %v25_v26 = vld [vmem:[%s1929_s1 + $0x40] sm:$0xff] }
   0x8   :  { %v26_v27 = vld [vmem:[%s1929_s1 + $0x48] sm:$0xff]  ;;  %v27_v28 = vld [vmem:[%s1929_s1 + $0x50] sm:$0xff]  ;;  %v28_v29 = vld [vmem:[%s1929_s1 + $0x58] sm:$0xff] }
   0x9   :  { %1311 = vmatpush3.bf16.msra.mxu1 %v1308_v5  ;;  %v231_v60 = vld [vmem:[%s1929_s1 + $0x60] sm:$0xff]  ;;  %v236_v62 = vld [vmem:[%s1930_s2 + $0x8] sm:$0xff]  ;;  %v237_v0 = vld [vmem:[%s1930_s2 + $0x10] sm:$0xff] }
   0xa   :  { %1313 = vmatprep.subr.bf16.mxu1 %v1312_v9  ;;  %v235_v63 = vld [vmem:[%s1930_s2] sm:$0xff]  ;;  %v238_v1 = vld [vmem:[%s1930_s2 + $0x18] sm:$0xff]  ;;  %vm1681_vm2 = vmpackc.low %vm16_vm1, %vm16_vm1 }
   0xb   :  { %v532_v11 = vld [vmem:[%s1929_s1 + $0xb8] sm:$0xff] }
   0xd   :  { %1315 = vmatpush3.bf16.msra.mxu1 %v1312_v9 }
   0xe   :  { %1317 = vmatprep.subr.bf16.mxu1 %v1316_v12 }
  0x11   :  { %1319 = vmatpush3.bf16.msra.mxu1 %v1316_v12 }
  0x12   :  { %1321 = vmatprep.subr.bf16.mxu1 %v1320_v15 }
  0x15   :  { %1323 = vmatpush3.bf16.msra.mxu1 %v1320_v15 }
  0x16   :  { %1325 = vmatprep.subr.bf16.mxu1 %v1324_v18 }
  0x19   :  { %1327 = vmatpush3.bf16.msra.mxu1 %v1324_v18 }
  0x1c   :  { %1159 = vmatmul.mubr.msk.f32.vlgmr.msra.gmra.mrb[0].mxu1 %vm41_vm0, %v18_v19  ;;  %v232_v19 = vld [vmem:[%s1929_s1 + $0x68] sm:$0xff] }
  0x1d   :  { %1161 = vmatprep.mubr.msk.f32.mxu1 %vm41_vm0, %v19_v20  ;;  %v233_v20 = vld [vmem:[%s1929_s1 + $0x70] sm:$0xff] }
  0x20   :  { %1162 = vmatmul.mubr.msk.f32.gmra.mrb[2].mxu1 %vm41_vm0, %v20_v21  ;;  %v234_v21 = vld [vmem:[%s1929_s1 + $0x78] sm:$0xff] }
  0x21   :  { %1164 = vmatprep.mubr.msk.f32.mxu1 %vm41_vm0, %v21_v22 }
  0x24   :  { %1165 = vmatmul.mubr.msk.f32.gmra.mrb[4].mxu1 %vm41_vm0, %v22_v23 }
  0x25   :  { %1167 = vmatprep.mubr.msk.f32.mxu1 %vm41_vm0, %v23_v24 }
  0x28   :  { %1168 = vmatmul.mubr.msk.f32.gmra.mrb[6].mxu1 %vm41_vm0, %v24_v25 }
  0x29   :  { %1170 = vmatprep.mubr.msk.f32.mxu1 %vm41_vm0, %v25_v26 }
  0x2c   :  { %1171 = vmatmul.mubr.msk.f32.gmra.mrb[8].mxu1 %vm41_vm0, %v26_v27 }
  0x2d   :  { %1173 = vmatprep.mubr.msk.f32.mxu1 %vm41_vm0, %v27_v28 }
  0x30   :  { %1174 = vmatmul.mubr.msk.f32.gmra.mrb[10].mxu1 %vm41_vm0, %v28_v29 }
  0x31   :  { %1200 = vmatprep.mubr.msk.f32.mxu1 %vm41_vm0, %v231_v60 }
  0xef   :  { %v1160_v30 = vpop.f32.mrb[0].mxu1 }
  0xf0   :  { %v144_v31 = vpop.f32.mrb[1].mxu1 }
  0xf3   :  { %v1163_v32 = vpop.f32.mrb[2].mxu1 }
  0xf4   :  { %v154_v33 = vpop.f32.mrb[3].mxu1 }
  0xf7   :  { %v1166_v34 = vpop.f32.mrb[4].mxu1 }
  0xf8   :  { %v204_v36 = vmax.f32 %v1160_v30, %v1166_v34  ;;  %v164_v37 = vpop.f32.mrb[5].mxu1 }
  0xf9   :  { %v203_v38 = vmax.f32 %v144_v31, %v164_v37 }
  0xfb   :  { %v1169_v39 = vpop.f32.mrb[6].mxu1 }
  0xfc   :  { %v206_v41 = vmax.f32 %v1163_v32, %v1169_v39  ;;  %v174_v42 = vpop.f32.mrb[7].mxu1 }
  0xfd   :  { %v205_v43 = vmax.f32 %v154_v33, %v174_v42 }
  0xff   :  { %v1172_v44 = vpop.f32.mrb[8].mxu1 }
 0x100   :  { %v208_v45 = vmax.f32 %v204_v36, %v1172_v44  ;;  %v184_v46 = vpop.f32.mrb[9].mxu1 }
 0x101   :  { %v207_v47 = vmax.f32 %v203_v38, %v184_v46 }
 0x102   :  { %v212_v48 = vsel %vm16_vm1, %v208_v45, 0.0 }
 0x103   :  { %v1336_v49 = vpack.c.bf16 %v208_v45, %v207_v47  ;;  %v1175_v50 = vpop.f32.mrb[10].mxu1  ;;  %v211_v51 = vsel %vm16_vm1, %v207_v47, 0.0 }
 0x104   :  { %v210_v52 = vmax.f32 %v206_v41, %v1175_v50  ;;  %v194_v53 = vpop.f32.mrb[11].mxu1  ;;  %v1458_v54 = vpack.i.bf16 %v212_v48, %v211_v51  ;;  %v384_v48 = vld [vmem:[%s1930_s2 + $0x20] sm:$0xff]  ;;  %v386_v50 = vld [vmem:[%s1930_s2 + $0x30] sm:$0xff] }
 0x105   :  { %v209_v55 = vmax.f32 %v205_v43, %v194_v53  ;;  %v380_v51 = vld [vmem:[%s1929_s1 + $0x80] sm:$0xff] }
 0x106   :  { %v214_v56 = vsel %vm16_vm1, %v210_v52, 0.0  ;;  %1459 = vrot.lane.b32.xlu1 %v1458_v54, %s1538_s5  ;;  %1449 = vrot.lane.b32.xlu0 %v1458_v54, %s1539_s6 }
 0x107   :  { %v213_v57 = vsel %vm16_vm1, %v209_v55, 0.0  ;;  %v1342_v58 = vpack.c.bf16 %v210_v52, %v209_v55  ;;  %v387_v52 = vld [vmem:[%s1930_s2 + $0x38] sm:$0xff]  ;;  %1230 = vmatprep.mubr.msk.f32.mxu0 %vm41_vm0, %v380_v51 }
 0x108   :  { %v1463_v59 = vpack.i.bf16 %v214_v56, %v213_v57 }
 0x10a   :  { %1464 = vrot.lane.b32.xlu1 %v1463_v59, %s1538_s5  ;;  %1454 = vrot.lane.b32.xlu0 %v1463_v59, %s1539_s6 }
 0x10e   :  { %246 = vperm.xlu1 %1469, %v236_v62   ;;  %241 = vperm.xlu0 %1468, %v235_v63  }
 0x112   :  { %251 = vperm.xlu1 %1469, %v237_v0   ;;  %256 = vperm.xlu0 %1468, %v238_v1  }
 0x178   :  { %v1450_v2 = vpop.permute.xlu0 %1449  ;;  %v1460_v10 = vpop.permute.xlu1 %1459 }
 0x179   :  { %v1452_v3 = vunpack.i.h.bf16 %v1450_v2  ;;  %v1451_v4 = vunpack.i.l.bf16 %v1450_v2  ;;  %v1462_v12 = vunpack.i.h.bf16 %v1460_v10  ;;  %v1461_v13 = vunpack.i.l.bf16 %v1460_v10 }
 0x17b   :  { %v1328_v5 = vpack.c.bf16 %v1452_v3, %v1451_v4  ;;  %v1348_v15 = vpack.c.bf16 %v1462_v12, %v1461_v13 }
 0x17c   :  { %v1455_v6 = vpop.permute.xlu0 %1454  ;;  %v1465_v14 = vpop.permute.xlu1 %1464 }
 0x17d   :  { %v1457_v7 = vunpack.i.h.bf16 %v1455_v6  ;;  %v1456_v8 = vunpack.i.l.bf16 %v1455_v6  ;;  %1329 = vmatprep.subr.bf16.mxu1 %v1328_v5  ;;  %v1467_v16 = vunpack.i.h.bf16 %v1465_v14  ;;  %v1466_v17 = vunpack.i.l.bf16 %v1465_v14  ;;  %v382_v6 = vld [vmem:[%s1929_s1 + $0x90] sm:$0xff] }
 0x17e   :  { %1331 = vmatpush3.bf16.msra.mxu1 %v1328_v5  ;;  %v381_v5 = vld [vmem:[%s1929_s1 + $0x88] sm:$0xff] }
 0x17f   :  { %v1332_v9 = vpack.c.bf16 %v1457_v7, %v1456_v8  ;;  %v1352_v18 = vpack.c.bf16 %v1467_v16, %v1466_v17  ;;  %v383_v7 = vld [vmem:[%s1929_s1 + $0x98] sm:$0xff] }
 0x181   :  { %1333 = vmatprep.subr.bf16.mxu1 %v1332_v9 }
 0x182   :  { %1335 = vmatpush3.bf16.msra.mxu1 %v1332_v9 }
 0x183   :  { %1338 = vmatprep.subr.msk.bf16.mxu1 %vm1681_vm2, %v1336_v49 }
 0x186   :  { %1341 = vmatpush3.bf16.msk.msra.mxu1 %vm1681_vm2, %v1336_v49  ;;  %v385_v49 = vld [vmem:[%s1930_s2 + $0x28] sm:$0xff] }
 0x187   :  { %1344 = vmatprep.subr.msk.bf16.mxu1 %vm1681_vm2, %v1342_v58 }
 0x18a   :  { %1347 = vmatpush3.bf16.msk.msra.mxu1 %vm1681_vm2, %v1342_v58 }
 0x18b   :  { %1349 = vmatprep.subr.bf16.mxu1 %v1348_v15 }
 0x18d   :  { %v242_v22 = vpop.permute.xlu0 %241  ;;  %v247_v23 = vpop.permute.xlu1 %246 }
 0x18e   :  { %1351 = vmatpush3.bf16.msra.mxu1 %v1348_v15 }
 0x18f   :  { %1353 = vmatprep.subr.bf16.mxu1 %v1352_v18 }
 0x191   :  { %v257_v30 = vpop.permute.xlu0 %256  ;;  %v252_v33 = vpop.permute.xlu1 %251 }
 0x192   :  { %1355 = vmatpush3.bf16.msra.mxu1 %v1352_v18 }
 0x195   :  { %1201 = vmatmul.mubr.msk.f32.vlgmr.msra.gmra.mrb[12].mxu1 %vm41_vm0, %v232_v19 }
 0x196   :  { %1203 = vmatprep.mubr.msk.f32.mxu1 %vm41_vm0, %v233_v20 }
 0x199   :  { %1204 = vmatmul.mubr.msk.f32.gmra.mrb[14].mxu1 %vm41_vm0, %v234_v21 }
 0x268   :  { %v1202_v24 = vpop.f32.mrb[12].mxu1 }
 0x269   :  { %v343_v25 = vadd.f32 %v1202_v24, %v247_v23  ;;  %v337_v26 = vpop.f32.mrb[13].mxu1 }
 0x26a   :  { %v338_v27 = vadd.f32 %v337_v26, %v242_v22 }
 0x26b   :  { %v357_v28 = vmax.f32 %v343_v25, 0.0 }
 0x26c   :  { %v356_v29 = vmax.f32 %v338_v27, 0.0  ;;  %v1205_v31 = vpop.f32.mrb[14].mxu1 }
 0x26d   :  { %v361_v32 = vsel %vm16_vm1, %v357_v28, 0.0  ;;  %v353_v34 = vadd.f32 %v1205_v31, %v257_v30  ;;  %v347_v36 = vpop.f32.mrb[15].mxu1 }
 0x26e   :  { %v360_v37 = vsel %vm16_vm1, %v356_v29, 0.0  ;;  %v1364_v38 = vpack.c.bf16 %v357_v28, %v356_v29  ;;  %v348_v39 = vadd.f32 %v347_v36, %v252_v33  ;;  %v533_v33 = vld [vmem:[%s1930_s2 + $0x40] sm:$0xff]  ;;  %v535_v36 = vld [vmem:[%s1930_s2 + $0x50] sm:$0xff] }
 0x26f   :  { %v359_v41 = vmax.f32 %v353_v34, 0.0  ;;  %v1470_v42 = vpack.i.bf16 %v361_v32, %v360_v37  ;;  %v534_v34 = vld [vmem:[%s1930_s2 + $0x48] sm:$0xff]  ;;  %v529_v37 = vld [vmem:[%s1929_s1 + $0xa0] sm:$0xff] }
 0x270   :  { %v358_v43 = vmax.f32 %v348_v39, 0.0  ;;  %1260 = vmatprep.mubr.msk.f32.mxu1 %vm41_vm0, %v529_v37 }
 0x271   :  { %v363_v44 = vsel %vm16_vm1, %v359_v41, 0.0  ;;  %1471 = vrot.lane.b32.xlu1 %v1470_v42, %s1539_s6 }
 0x272   :  { %v362_v45 = vsel %vm16_vm1, %v358_v43, 0.0  ;;  %v1370_v46 = vpack.c.bf16 %v359_v41, %v358_v43 }
 0x273   :  { %v1475_v47 = vpack.i.bf16 %v363_v44, %v362_v45 }
 0x275   :  { %1476 = vrot.lane.b32.xlu0 %v1475_v47, %s1539_s6  ;;  %1481 = vrot.lane.b32.xlu1 %v1470_v42, %s1538_s5 }
 0x279   :  { %1486 = vrot.lane.b32.xlu0 %v1475_v47, %s1538_s5  ;;  %390 = vperm.xlu1 %1469, %v384_v48  }
 0x27d   :  { %395 = vperm.xlu0 %1468, %v385_v49   ;;  %400 = vperm.xlu1 %1469, %v386_v50  }
 0x281   :  { %405 = vperm.xlu0 %1468, %v387_v52  }
 0x2e3   :  { %v1472_v53 = vpop.permute.xlu1 %1471 }
 0x2e4   :  { %v1474_v54 = vunpack.i.h.bf16 %v1472_v53  ;;  %v1473_v55 = vunpack.i.l.bf16 %v1472_v53 }
 0x2e6   :  { %v1356_v56 = vpack.c.bf16 %v1474_v54, %v1473_v55 }
 0x2e7   :  { %v1477_v57 = vpop.permute.xlu0 %1476  ;;  %v1482_v61 = vpop.permute.xlu1 %1481 }
 0x2e8   :  { %v1479_v58 = vunpack.i.h.bf16 %v1477_v57  ;;  %v1478_v59 = vunpack.i.l.bf16 %v1477_v57  ;;  %1357 = vmatprep.subr.bf16.mxu0 %v1356_v56  ;;  %v1484_v62 = vunpack.i.h.bf16 %v1482_v61  ;;  %v1483_v63 = vunpack.i.l.bf16 %v1482_v61  ;;  %v531_v57 = vld [vmem:[%s1929_s1 + $0xb0] sm:$0xff] }
 0x2e9   :  { %1359 = vmatpush3.bf16.msra.mxu0 %v1356_v56  ;;  %v530_v56 = vld [vmem:[%s1929_s1 + $0xa8] sm:$0xff] }
 0x2ea   :  { %v1360_v60 = vpack.c.bf16 %v1479_v58, %v1478_v59  ;;  %v1376_v1 = vpack.c.bf16 %v1484_v62, %v1483_v63 }
 0x2eb   :  { %v1487_v0 = vpop.permute.xlu0 %1486 }
 0x2ec   :  { %1361 = vmatprep.subr.bf16.mxu0 %v1360_v60  ;;  %v1489_v2 = vunpack.i.h.bf16 %v1487_v0  ;;  %v1488_v3 = vunpack.i.l.bf16 %v1487_v0 }
 0x2ed   :  { %1363 = vmatpush3.bf16.msra.mxu0 %v1360_v60 }
 0x2ee   :  { %1366 = vmatprep.subr.msk.bf16.mxu0 %vm1681_vm2, %v1364_v38  ;;  %v1380_v4 = vpack.c.bf16 %v1489_v2, %v1488_v3 }
 0x2f1   :  { %1369 = vmatpush3.bf16.msk.msra.mxu0 %vm1681_vm2, %v1364_v38  ;;  %v536_v38 = vld [vmem:[%s1930_s2 + $0x58] sm:$0xff] }
 0x2f2   :  { %1372 = vmatprep.subr.msk.bf16.mxu0 %vm1681_vm2, %v1370_v46 }
 0x2f5   :  { %1375 = vmatpush3.bf16.msk.msra.mxu0 %vm1681_vm2, %v1370_v46 }
 0x2f6   :  { %1377 = vmatprep.subr.bf16.mxu0 %v1376_v1 }
 0x2f8   :  { %v391_v9 = vpop.permute.xlu1 %390 }
 0x2f9   :  { %1379 = vmatpush3.bf16.msra.mxu0 %v1376_v1 }
 0x2fa   :  { %1381 = vmatprep.subr.bf16.mxu0 %v1380_v4 }
 0x2fc   :  { %v396_v8 = vpop.permute.xlu0 %395  ;;  %v401_v19 = vpop.permute.xlu1 %400 }
 0x2fd   :  { %1383 = vmatpush3.bf16.msra.mxu0 %v1380_v4 }
 0x300   :  { %1231 = vmatmul.mubr.msk.f32.vlgmr.msra.gmra.mrb[0].mxu0 %vm41_vm0, %v381_v5  ;;  %v406_v16 = vpop.permute.xlu0 %405 }
 0x301   :  { %1233 = vmatprep.mubr.msk.f32.mxu0 %vm41_vm0, %v382_v6 }
 0x304   :  { %1234 = vmatmul.mubr.msk.f32.gmra.mrb[2].mxu0 %vm41_vm0, %v383_v7 }
 0x3d3   :  { %v1232_v10 = vpop.f32.mrb[0].mxu0 }
 0x3d4   :  { %v492_v12 = vadd.f32 %v1232_v10, %v396_v8  ;;  %v486_v13 = vpop.f32.mrb[1].mxu0 }
 0x3d5   :  { %v487_v14 = vadd.f32 %v486_v13, %v391_v9 }
 0x3d6   :  { %v506_v15 = vmax.f32 %v492_v12, 0.0 }
 0x3d7   :  { %v505_v17 = vmax.f32 %v487_v14, 0.0  ;;  %v1235_v18 = vpop.f32.mrb[2].mxu0 }
 0x3d8   :  { %v510_v20 = vsel %vm16_vm1, %v506_v15, 0.0  ;;  %v502_v21 = vadd.f32 %v1235_v18, %v406_v16  ;;  %v496_v22 = vpop.f32.mrb[3].mxu0 }
 0x3d9   :  { %v509_v23 = vsel %vm16_vm1, %v505_v17, 0.0  ;;  %v1392_v24 = vpack.c.bf16 %v506_v15, %v505_v17  ;;  %v497_v25 = vadd.f32 %v496_v22, %v401_v19  ;;  %v706_v19 = vld [vmem:[%s1930_s2 + $0x80] sm:$0xff] }
 0x3da   :  { %v508_v26 = vmax.f32 %v502_v21, 0.0  ;;  %v1490_v27 = vpack.i.bf16 %v510_v20, %v509_v23  ;;  %v707_v20 = vld [vmem:[%s1930_s2 + $0x88] sm:$0xff] }
 0x3db   :  { %v507_v28 = vmax.f32 %v497_v25, 0.0 }
 0x3dc   :  { %v512_v29 = vsel %vm16_vm1, %v508_v26, 0.0  ;;  %1491 = vrot.lane.b32.xlu1 %v1490_v27, %s1539_s6 }
 0x3dd   :  { %v511_v30 = vsel %vm16_vm1, %v507_v28, 0.0  ;;  %v1398_v31 = vpack.c.bf16 %v508_v26, %v507_v28 }
 0x3de   :  { %v1495_v32 = vpack.i.bf16 %v512_v29, %v511_v30 }
 0x3e0   :  { %1496 = vrot.lane.b32.xlu0 %v1495_v32, %s1539_s6  ;;  %1501 = vrot.lane.b32.xlu1 %v1490_v27, %s1538_s5 }
 0x3e4   :  { %1506 = vrot.lane.b32.xlu0 %v1495_v32, %s1538_s5  ;;  %539 = vperm.xlu1 %1469, %v533_v33  }
 0x3e8   :  { %544 = vperm.xlu0 %1468, %v534_v34   ;;  %549 = vperm.xlu1 %1469, %v535_v36  }
 0x3ec   :  { %554 = vperm.xlu0 %1468, %v536_v38  }
 0x44e   :  { %v1492_v39 = vpop.permute.xlu1 %1491 }
 0x44f   :  { %v1494_v41 = vunpack.i.h.bf16 %v1492_v39  ;;  %v1493_v42 = vunpack.i.l.bf16 %v1492_v39 }
 0x451   :  { %v1384_v43 = vpack.c.bf16 %v1494_v41, %v1493_v42 }
 0x452   :  { %v1497_v44 = vpop.permute.xlu0 %1496  ;;  %v1502_v48 = vpop.permute.xlu1 %1501 }
 0x453   :  { %v1499_v45 = vunpack.i.h.bf16 %v1497_v44  ;;  %v1498_v46 = vunpack.i.l.bf16 %v1497_v44  ;;  %1385 = vmatprep.subr.bf16.mxu1 %v1384_v43  ;;  %v1504_v49 = vunpack.i.h.bf16 %v1502_v48  ;;  %v1503_v50 = vunpack.i.l.bf16 %v1502_v48 }
 0x454   :  { %1387 = vmatpush3.bf16.msra.mxu1 %v1384_v43 }
 0x455   :  { %v1388_v47 = vpack.c.bf16 %v1499_v45, %v1498_v46  ;;  %v1404_v52 = vpack.c.bf16 %v1504_v49, %v1503_v50 }
 0x456   :  { %v1507_v51 = vpop.permute.xlu0 %1506 }
 0x457   :  { %1389 = vmatprep.subr.bf16.mxu1 %v1388_v47  ;;  %v1509_v53 = vunpack.i.h.bf16 %v1507_v51  ;;  %v1508_v54 = vunpack.i.l.bf16 %v1507_v51 }
 0x458   :  { %1391 = vmatpush3.bf16.msra.mxu1 %v1388_v47 }
 0x459   :  { %1394 = vmatprep.subr.msk.bf16.mxu1 %vm1681_vm2, %v1392_v24  ;;  %v1408_v55 = vpack.c.bf16 %v1509_v53, %v1508_v54 }
 0x45c   :  { %1397 = vmatpush3.bf16.msk.msra.mxu1 %vm1681_vm2, %v1392_v24 }
 0x45d   :  { %1400 = vmatprep.subr.msk.bf16.mxu1 %vm1681_vm2, %v1398_v31 }
 0x460   :  { %1403 = vmatpush3.bf16.msk.msra.mxu1 %vm1681_vm2, %v1398_v31 }
 0x461   :  { %1405 = vmatprep.subr.bf16.mxu1 %v1404_v52 }
 0x463   :  { %v540_v58 = vpop.permute.xlu1 %539 }
 0x464   :  { %1407 = vmatpush3.bf16.msra.mxu1 %v1404_v52 }
 0x465   :  { %1409 = vmatprep.subr.bf16.mxu1 %v1408_v55 }
 0x467   :  { %v545_v59 = vpop.permute.xlu0 %544  ;;  %v550_v1 = vpop.permute.xlu1 %549 }
 0x468   :  { %1411 = vmatpush3.bf16.msra.mxu1 %v1408_v55  ;;  %v702_v55 = vld [vmem:[%s1930_s2 + $0x60] sm:$0xff] }
 0x46b   :  { %1261 = vmatmul.mubr.msk.f32.vlgmr.msra.gmra.mrb[16].mxu1 %vm41_vm0, %v530_v56  ;;  %v555_v4 = vpop.permute.xlu0 %554  ;;  %v703_v56 = vld [vmem:[%s1930_s2 + $0x68] sm:$0xff] }
 0x46c   :  { %1263 = vmatprep.mubr.msk.f32.mxu1 %vm41_vm0, %v531_v57 }
 0x46f   :  { %1264 = vmatmul.mubr.msk.f32.gmra.mrb[18].mxu1 %vm41_vm0, %v532_v11 }
 0x53e   :  { %v1262_v60 = vpop.f32.mrb[16].mxu1 }
 0x53f   :  { %v641_v61 = vadd.f32 %v1262_v60, %v545_v59  ;;  %v635_v62 = vpop.f32.mrb[17].mxu1  ;;  %v704_v60 = vld [vmem:[%s1930_s2 + $0x70] sm:$0xff] }
 0x540   :  { %v636_v63 = vadd.f32 %v635_v62, %v540_v58 }
 0x541   :  { %v655_v0 = vmax.f32 %v641_v61, 0.0  ;;  %v705_v61 = vld [vmem:[%s1930_s2 + $0x78] sm:$0xff] }
 0x542   :  { %v654_v2 = vmax.f32 %v636_v63, 0.0  ;;  %v1265_v3 = vpop.f32.mrb[18].mxu1 }
 0x543   :  { %v645_v5 = vpop.f32.mrb[19].mxu1  ;;  %v1803_v6 = vsel %vm16_vm1, %v655_v0, 0.0  ;;  %v651_v7 = vadd.f32 %v1265_v3, %v555_v4  ;;  %v709_v3 = vld [vmem:[%s1930_s2 + $0x98] sm:$0xff]  ;;  %v1870_v4 = vshrl.u32 %v14_v35, 7  ;;  %v1541_v35 = vmov 1.0|1.0  }
 0x544   :  { %v646_v8 = vadd.f32 %v645_v5, %v550_v1  ;;  %664 = vadd.xlane.f32.xlu0 %v1803_v6  ;;  %v1808_v9 = vsel %vm16_vm1, %v654_v2, 0.0  ;;  %v675_v13 = vmul.f32 %v1803_v6, %v1803_v6  ;;  %v708_v2 = vld [vmem:[%s1930_s2 + $0x90] sm:$0xff]  ;;  %v819_v5 = vmul.u32 3, %v1647_v40  ;;  %v940_v40 = vld [vmem:[%s1930_s2 + $0xb8] sm:$0xff] }
 0x545   :  { %662 = vadd.xlane.f32.xlu1 %v1808_v9  ;;  %v674_v10 = vmul.f32 %v1808_v9, %v1808_v9  ;;  %v657_v14 = vmax.f32 %v651_v7, 0.0  ;;  %v804_v7 = vadd.s32 8, %v1870_v4 }
 0x546   :  { %v656_v12 = vmax.f32 %v646_v8, 0.0  ;;  %vm820_vm3 = vcmp.eq.s32.totalorder %v1870_v4, %v819_v5  ;;  %v805_v8 = vadd.s32 16, %v1870_v4 }
 0x547   :  { %v1822_v16 = vsel %vm16_vm1, %v657_v14, 0.0  ;;  %vm821_vm4 = vcmp.eq.s32.totalorder %v804_v7, %v819_v5  ;;  %v809_v14 = vadd.s32 48, %v1870_v4 }
 0x548   :  { %678 = vadd.xlane.f32.xlu0 %v674_v10  ;;  %v1817_v15 = vsel %vm16_vm1, %v656_v12, 0.0  ;;  %v677_v18 = vmul.f32 %v1822_v16, %v1822_v16  ;;  %v806_v10 = vadd.s32 24, %v1870_v4  ;;  %v807_v12 = vadd.s32 32, %v1870_v4  ;;  %vm1412_vm6 = vmpackc.low %vm821_vm4, %vm820_vm3 }
 0x549   :  { %680 = vadd.xlane.f32.xlu1 %v675_v13  ;;  %v676_v17 = vmul.f32 %v1817_v15, %v1817_v15  ;;  %v808_v13 = vadd.s32 40, %v1870_v4  ;;  %vm822_vm5 = vcmp.eq.s32.totalorder %v805_v8, %v819_v5  ;;  %1413 = vmatprep.subr.msk.bf16.mxu0 %vm1412_vm6, %v1541_v35  ;;  %vm826_vm12 = vcmp.eq.s32.totalorder %v809_v14, %v819_v5 }
 0x54a   :  { %vm823_vm7 = vcmp.eq.s32.totalorder %v806_v10, %v819_v5  ;;  %vm824_vm9 = vcmp.eq.s32.totalorder %v807_v12, %v819_v5  ;;  %1415 = vmatpush3.bf16.msk.msra.mxu0 %vm1412_vm6, %v1541_v35 }
 0x54b   :  { %vm1416_vm8 = vmpackc.low %vm823_vm7, %vm822_vm5  ;;  %vm825_vm10 = vcmp.eq.s32.totalorder %v808_v13, %v819_v5 }
 0x54c   :  { %666 = vadd.xlane.f32.xlu0 %v1817_v15  ;;  %1417 = vmatprep.subr.msk.bf16.mxu0 %vm1416_vm8, %v1541_v35  ;;  %vm1420_vm11 = vmpackc.low %vm825_vm10, %vm824_vm9 }
 0x54d   :  { %668 = vadd.xlane.f32.xlu1 %v1822_v16 }
 0x54e   :  { %1419 = vmatpush3.bf16.msk.msra.mxu0 %vm1416_vm8, %v1541_v35 }
 0x54f   :  { %1421 = vmatprep.subr.msk.bf16.mxu0 %vm1420_vm11, %v1541_v35 }
 0x550   :  { %682 = vadd.xlane.f32.xlu0 %v676_v17  ;;  %v810_v17 = vadd.s32 56, %v1870_v4 }
 0x551   :  { %684 = vadd.xlane.f32.xlu1 %v677_v18  ;;  %v811_v18 = vadd.s32 64, %v1870_v4 }
 0x552   :  { %vm827_vm13 = vcmp.eq.s32.totalorder %v810_v17, %v819_v5  ;;  %1423 = vmatpush3.bf16.msk.msra.mxu0 %vm1420_vm11, %v1541_v35 }
 0x553   :  { %vm1424_vm14 = vmpackc.low %vm827_vm13, %vm826_vm12  ;;  %vm828_vm15 = vcmp.eq.s32.totalorder %v811_v18, %v819_v5 }
 0x554   :  { %1425 = vmatprep.subr.msk.bf16.mxu0 %vm1424_vm14, %v1541_v35 }
 0x556   :  { %1427 = vmatpush3.bf16.msk.msra.mxu0 %vm1424_vm14, %v1541_v35 }
 0x562   :  { %752 = vperm.xlu1 %1469, %v706_v19   ;;  %v812_v19 = vadd.s32 72, %v1870_v4 }
 0x564   :  { %vm829_vm0 = vcmp.eq.s32.totalorder %v812_v19, %v819_v5 }
 0x565   :  { %vm1428_vm2 = vmpackc.low %vm829_vm0, %vm828_vm15 }
 0x566   :  { %757 = vperm.xlu0 %1468, %v707_v20   ;;  %v813_v20 = vadd.s32 80, %v1870_v4  ;;  %1429 = vmatprep.subr.msk.bf16.mxu0 %vm1428_vm2, %v1541_v35 }
 0x567   :  { %1431 = vmatpush3.bf16.msk.msra.mxu0 %vm1428_vm2, %v1541_v35 }
 0x568   :  { %vm830_vm3 = vcmp.eq.s32.totalorder %v813_v20, %v819_v5 }
 0x5d1   :  { %v665_v21 = vpop.xlane.xlu0 %664 }
 0x5d2   :  { %v663_v22 = vpop.xlane.xlu1 %662  ;;  %v1835_v23 = vmul.f32 0.010416667, %v665_v21  ;;  %v814_v21 = vadd.s32 88, %v1870_v4 }
 0x5d3   :  { %v1837_v24 = vmul.f32 0.010416667, %v663_v22  ;;  %v815_v22 = vadd.s32 96, %v1870_v4 }
 0x5d4   :  { %v691_v29 = vmul.f32 %v1835_v23, %v1835_v23  ;;  %vm831_vm4 = vcmp.eq.s32.totalorder %v814_v21, %v819_v5 }
 0x5d5   :  { %v690_v25 = vmul.f32 %v1837_v24, %v1837_v24  ;;  %v679_v26 = vpop.xlane.xlu0 %678  ;;  %vm1432_vm5 = vmpackc.low %vm831_vm4, %vm830_vm3  ;;  %vm832_vm6 = vcmp.eq.s32.totalorder %v815_v22, %v819_v5 }
 0x5d6   :  { %v686_v27 = vmul.f32 0.010416667, %v679_v26  ;;  %v681_v28 = vpop.xlane.xlu1 %680  ;;  %1433 = vmatprep.subr.msk.bf16.mxu0 %vm1432_vm5, %v1541_v35  ;;  %v817_v26 = vadd.s32 112, %v1870_v4 }
 0x5d7   :  { %v687_v30 = vmul.f32 0.010416667, %v681_v28  ;;  %1435 = vmatpush3.bf16.msk.msra.mxu0 %vm1432_vm5, %v1541_v35 }
 0x5d8   :  { %v694_v31 = vsub.f32 %v686_v27, %v690_v25  ;;  %v816_v25 = vadd.s32 104, %v1870_v4  ;;  %v818_v27 = vadd.s32 120, %v1870_v4  ;;  %vm834_vm9 = vcmp.eq.s32.totalorder %v817_v26, %v819_v5 }
 0x5d9   :  { %v695_v32 = vsub.f32 %v687_v30, %v691_v29  ;;  %v667_v33 = vpop.xlane.xlu0 %666  ;;  %v722_v30 = vsub.f32 %v1808_v9, %v1837_v24 }
 0x5da   :  { %v698_v34 = vmax.f32 %v694_v31, 0.0  ;;  %v1843_v36 = vmul.f32 0.010416667, %v667_v33  ;;  %v669_v37 = vpop.xlane.xlu1 %668  ;;  %vm833_vm7 = vcmp.eq.s32.totalorder %v816_v25, %v819_v5  ;;  %vm835_vm10 = vcmp.eq.s32.totalorder %v818_v27, %v819_v5 }
 0x5db   :  { %v699_v38 = vmax.f32 %v695_v32, 0.0  ;;  %v1845_v39 = vmul.f32 0.010416667, %v669_v37  ;;  %vm1436_vm8 = vmpackc.low %vm833_vm7, %vm832_vm6  ;;  %v723_v32 = vsub.f32 %v1803_v6, %v1835_v23 }
 0x5dc   :  { %v710_v41 = vadd.f32 1e-05, %v698_v34  ;;  %v692_v44 = vmul.f32 %v1843_v36, %v1843_v36  ;;  %1437 = vmatprep.subr.msk.bf16.mxu0 %vm1436_vm8, %v1541_v35  ;;  %vm1440_vm11 = vmpackc.low %vm835_vm10, %vm834_vm9  ;;  %v724_v9 = vsub.f32 %v1817_v15, %v1843_v36 }
 0x5dd   :  { %v711_v42 = vadd.f32 1e-05, %v699_v38  ;;  %v683_v43 = vpop.xlane.xlu0 %682  ;;  %v693_v47 = vmul.f32 %v1845_v39, %v1845_v39  ;;  %1439 = vmatpush3.bf16.msk.msra.mxu0 %vm1436_vm8, %v1541_v35  ;;  %v725_v23 = vsub.f32 %v1822_v16, %v1845_v39  ;;  %v938_v16 = vld [vmem:[%s1930_s2 + $0xa8] sm:$0xff]  ;;  %v937_v39 = vld [vmem:[%s1930_s2 + $0xa0] sm:$0xff] }
 0x5de   :  { %1530 = vrsqrt.f32 %v710_v41  ;;  %v688_v45 = vmul.f32 0.010416667, %v683_v43  ;;  %v685_v46 = vpop.xlane.xlu1 %684  ;;  %1441 = vmatprep.subr.msk.bf16.mxu0 %vm1440_vm11, %v1541_v35 }
 0x5df   :  { %1532 = vrsqrt.f32 %v711_v42  ;;  %v689_v48 = vmul.f32 0.010416667, %v685_v46 }
 0x5e0   :  { %v696_v49 = vsub.f32 %v688_v45, %v692_v44 }
 0x5e1   :  { %v697_v50 = vsub.f32 %v689_v48, %v693_v47  ;;  %1443 = vmatpush3.bf16.msk.msra.mxu0 %vm1440_vm11, %v1541_v35 }
 0x5e2   :  { %v700_v51 = vmax.f32 %v696_v49, 0.0  ;;  %v753_v29 = vpop.permute.xlu1 %752 }
 0x5e3   :  { %v701_v52 = vmax.f32 %v697_v50, 0.0 }
 0x5e4   :  { %v712_v53 = vadd.f32 1e-05, %v700_v51 }
 0x5e5   :  { %v713_v54 = vadd.f32 1e-05, %v701_v52  ;;  %v758_v28 = vpop.permute.xlu0 %757  ;;  %v939_v52 = vld [vmem:[%s1930_s2 + $0xb0] sm:$0xff] }
 0x5e6   :  { %1534 = vrsqrt.f32 %v712_v53  ;;  %v941_v53 = vld [vmem:[%s1930_s2 + $0xc0] sm:$0x1] }
 0x5e7   :  { %1536 = vrsqrt.f32 %v713_v54 }
 0x5e8   :  { %v1531_v57 = vpop.eup %1530 }
 0x5e9   :  { %v1533_v11 = vpop.eup %1532  ;;  %v718_v58 = vmul.f32 %v1531_v57, %v702_v55 }
 0x5ea   :  { %v719_v59 = vmul.f32 %v1533_v11, %v703_v56 }
 0x5eb   :  { %728 = vperm.xlu0 %1468, %v718_v58  }
 0x5ec   :  { %733 = vperm.xlu1 %1469, %v719_v59  }
 0x5f0   :  { %v1535_v62 = vpop.eup %1534 }
 0x5f1   :  { %v1537_v63 = vpop.eup %1536  ;;  %v720_v0 = vmul.f32 %v1535_v62, %v704_v60 }
 0x5f2   :  { %v721_v1 = vmul.f32 %v1537_v63, %v705_v61 }
 0x5f3   :  { %738 = vperm.xlu1 %1469, %v720_v0  }
 0x5f4   :  { %743 = vperm.xlu0 %1468, %v721_v1  }
 0x5f7   :  { %762 = vperm.xlu1 %1469, %v708_v2  }
 0x5f8   :  { %767 = vperm.xlu0 %1468, %v709_v3  }
 0x66a   :  { %v729_v31 = vpop.permute.xlu0 %728 }
 0x66b   :  { %v746_v33 = vmul.f32 %v729_v31, %v722_v30  ;;  %v734_v34 = vpop.permute.xlu1 %733 }
 0x66c   :  { %v747_v37 = vmul.f32 %v734_v34, %v723_v32 }
 0x66d   :  { %v770_v38 = vadd.f32 %v753_v29, %v746_v33 }
 0x66e   :  { %v771_v41 = vadd.f32 %v758_v28, %v747_v37 }
 0x66f   :  { %v774_v42 = vsel %vm16_vm1, %v770_v38, -1e+30 }
 0x670   :  { %v775_v43 = vsel %vm16_vm1, %v771_v41, -1e+30  ;;  %v983_v41 = vsub.s32 0, %v1870_v4 }
 0x671   :  { %v1515_v44 = vpack.i.bf16 %v775_v43, %v774_v42 }
 0x672   :  { %v739_v45 = vpop.permute.xlu1 %738 }
 0x673   :  { %1516 = vrot.lane.b32.xlu0 %v1515_v44, %s1538_s5  ;;  %1511 = vrot.lane.b32.xlu1 %v1515_v44, %s1539_s6  ;;  %v744_v6 = vpop.permute.xlu0 %743  ;;  %v748_v24 = vmul.f32 %v739_v45, %v724_v9 }
 0x674   :  { %v749_v46 = vmul.f32 %v744_v6, %v725_v23 }
 0x676   :  { %v763_v47 = vpop.permute.xlu1 %762 }
 0x677   :  { %v772_v48 = vadd.f32 %v763_v47, %v748_v24  ;;  %v768_v49 = vpop.permute.xlu0 %767 }
 0x678   :  { %v773_v50 = vadd.f32 %v768_v49, %v749_v46 }
 0x679   :  { %v776_v51 = vsel %vm16_vm1, %v772_v48, -1e+30 }
 0x67a   :  { %v777_v15 = vsel %vm16_vm1, %v773_v50, -1e+30 }
 0x67b   :  { %v1525_v36 = vpack.i.bf16 %v777_v15, %v776_v51 }
 0x67d   :  { %1526 = vrot.lane.b32.xlu0 %v1525_v36, %s1538_s5  ;;  %1521 = vrot.lane.b32.xlu1 %v1525_v36, %s1539_s6 }
 0x681   :  { %949 = vperm.xlu0 %1468, %v938_v16   ;;  %944 = vperm.xlu1 %1469, %v937_v39  }
 0x685   :  { %959 = vperm.xlu0 %1468, %v940_v40   ;;  %954 = vperm.xlu1 %1469, %v939_v52  }
 0x689   :  { %977 = vperm.xlu1 %1469, %v941_v53  }
 0x6e5   :  { %v1512_v54 = vpop.permute.xlu1 %1511  ;;  %v1517_v55 = vpop.permute.xlu0 %1516 }
 0x6e6   :  { %v1514_v56 = vunpack.i.h.bf16 %v1512_v54  ;;  %v1513_v57 = vunpack.i.l.bf16 %v1512_v54  ;;  %v1519_v59 = vunpack.i.h.bf16 %v1517_v55  ;;  %v1518_v60 = vunpack.i.l.bf16 %v1517_v55 }
 0x6e8   :  { %v787_v11 = vmax.f32 %v1514_v56, %v775_v43  ;;  %v786_v58 = vmax.f32 %v1513_v57, %v774_v42 }
 0x6ea   :  { %v799_v61 = vmax.f32 %v787_v11, %v1519_v59  ;;  %v798_v62 = vmax.f32 %v786_v58, %v1518_v60 }
 0x6ec   :  { %1298 = vmatprep.mubr.f32.mxu0 %v798_v62 }
 0x6ed   :  { %1299 = vmatmul.mubr.f32.vlgmr.msra.gmra.mrb[4].mxu0 %v799_v61 }
 0x6ef   :  { %v1522_v63 = vpop.permute.xlu1 %1521  ;;  %v1527_v0 = vpop.permute.xlu0 %1526 }
 0x6f0   :  { %v1524_v1 = vunpack.i.h.bf16 %v1522_v63  ;;  %v1523_v2 = vunpack.i.l.bf16 %v1522_v63  ;;  %v1529_v7 = vunpack.i.h.bf16 %v1527_v0  ;;  %v1528_v8 = vunpack.i.l.bf16 %v1527_v0 }
 0x6f2   :  { %v789_v3 = vmax.f32 %v1524_v1, %v777_v15  ;;  %v788_v5 = vmax.f32 %v1523_v2, %v776_v51 }
 0x6f4   :  { %v801_v10 = vmax.f32 %v789_v3, %v1529_v7  ;;  %v800_v12 = vmax.f32 %v788_v5, %v1528_v8 }
 0x6f6   :  { %1301 = vmatprep.mubr.f32.mxu0 %v800_v12 }
 0x6f7   :  { %1302 = vmatmul.mubr.f32.gmra.mrb[6].mxu0 %v801_v10 }
 0x700   :  { %v950_v13 = vpop.permute.xlu0 %949  ;;  %v945_v14 = vpop.permute.xlu1 %944 }
 0x704   :  { %v955_v22 = vpop.permute.xlu1 %954  ;;  %v960_v27 = vpop.permute.xlu0 %959 }
 0x708   :  { %v978_v42 = vpop.permute.xlu1 %977 }
 0x7c0   :  { %v1300_v35 = vpop.f32.mrb[4].mxu0 }
 0x7c1   :  { %v963_v17 = vmul.f32 %v1300_v35, %v950_v13  ;;  %v918_v18 = vpop.f32.mrb[5].mxu0 }
 0x7c2   :  { %v962_v19 = vmul.f32 %v945_v14, %v918_v18 }
 0x7c4   :  { %v966_v20 = vadd.f32 %v963_v17, %v962_v19 }
 0x7ca   :  { %v1303_v21 = vpop.f32.mrb[6].mxu0 }
 0x7cb   :  { %v928_v25 = vpop.f32.mrb[7].mxu0  ;;  %v965_v28 = vmul.f32 %v1303_v21, %v960_v27 }
 0x7cc   :  { %v964_v26 = vmul.f32 %v955_v22, %v928_v25 }
 0x7ce   :  { %v967_v29 = vadd.f32 %v966_v20, %v964_v26 }
 0x7d0   :  { %v968_v30 = vadd.f32 %v967_v29, %v965_v28 }
 0x7d2   :  { %v969_v31 = vrot.slane %v968_v30, 4 }
 0x7d4   :  { %v970_v32 = vadd.f32 %v969_v31, %v968_v30 }
 0x7d6   :  { %v971_v33 = vrot.slane %v970_v32, 2 }
 0x7d8   :  { %v972_v34 = vadd.f32 %v971_v33, %v970_v32 }
 0x7da   :  { %v973_v37 = vrot.slane %v972_v34, 1 }
 0x7dc   :  { %v974_v38 = vadd.f32 %v973_v37, %v972_v34 }
 0x7de   :  { %v980_v43 = vadd.f32 %v978_v42, %v974_v38 }
 0x7e0   :  { %v984_v44 = vrot.slane %v980_v43, %v983_v41 }
 0x7e2   :  { %985 = vst [vmem:[%s1931_s3] sm:$0xff] %v984_v44 }

</bundles_post_ra>
